<compile_context>
chip_gen: v7x
topology: tpu7x:2x2x1
jax: 0.10.0
libtpu: 0.0.40
codegen_flags: <defaults>
</compile_context>

<pallas_src>
import functools

import jax
import jax.numpy as jnp
import numpy as np
from jax.experimental import pallas as pl
from jax.experimental.pallas import tpu as pltpu

# 1-D Gaussian taps (outer product reproduces the PyTorch 5x5 kernel).
_GAUSS_TAPS = (0.05, 0.25, 0.4, 0.25, 0.05)
_EPS = 0.001  # CharbonnierLoss eps


def _blur_matrix(n):
    """n x n matrix B with (B @ v)[i] = sum_k taps[k] * v[clamp(i + k - 2)]."""
    m = np.zeros((n, n), dtype=np.float64)
    for i in range(n):
        for k in range(-2, 3):
            j = min(max(i + k, 0), n - 1)
            m[i, j] += _GAUSS_TAPS[k + 2]
    return m


@functools.lru_cache(maxsize=None)
def _laplacian_operators(h, w, b):
    """Return (L_big, R) such that lap(A) = A - L_big @ A_stacked @ R.

    lap(A) = A - conv_gauss(4 * even_mask(conv_gauss(A)))   (replicate pad)
           = A - (2*Bh@Dh@Bh) @ A @ (2*Bw^T@Dw@Bw^T)
    L_big = kron(I_b, L_h) so `b` vertically-stacked (n, c) slabs are handled
    by a single row-operator matmul.
    """
    bh = _blur_matrix(h)
    bw = _blur_matrix(w)
    dh = np.diag((np.arange(h) % 2 == 0).astype(np.float64))
    dw = np.diag((np.arange(w) % 2 == 0).astype(np.float64))
    l_h = 2.0 * bh @ dh @ bh              # row operator (h, h)
    r_w = 2.0 * bw.T @ dw @ bw.T          # column operator (w, w), right-multiplied
    l_big = np.kron(np.eye(b), l_h)       # (b*h, b*h) block-diagonal
    return (jnp.asarray(l_big, dtype=jnp.float32),
            jnp.asarray(r_w, dtype=jnp.float32))


def _pick_slabs_per_step(nc, h, w):
    """How many (n, c) slabs to stack per grid step (must divide nc)."""
    best = 1
    for b in range(1, nc + 1):
        if nc % b:
            continue
        if b * h > 256:                   # keep the kron row-operator modest
            continue
        if b * h * w * 4 > (2 << 20):     # keep input blocks well inside VMEM
            continue
        best = b
    return best


def _edge_loss_kernel(x_ref, y_ref, l_ref, r_ref, out_ref):
    # Laplacian is linear => lap(x) - lap(y) == lap(x - y): one Laplacian only.
    d = x_ref[0].astype(jnp.float32) - y_ref[0].astype(jnp.float32)   # (BH, W)
    # lap(d) = d - L @ d @ R ; both contractions run on the MXU.
    t = jnp.dot(d, r_ref[...], preferred_element_type=jnp.float32)    # (BH, W)
    f = jnp.dot(l_ref[...], t, preferred_element_type=jnp.float32)    # (BH, W)
    lap = d - f
    charb = jnp.sqrt(lap * lap + jnp.float32(_EPS * _EPS))
    # Lane-dense per-step partial sums (sublane reduce only); the final
    # reduction is done in the wrapper so the grid stays fully parallel.
    out_ref[...] = jnp.sum(charb, axis=0, keepdims=True)[None]


def edge_loss(x, y):
    """x, y: (N, C, H, W). Returns the scalar EdgeLoss (Charbonnier of Laplacians)."""
    n, c, h, w = x.shape
    nc = n * c
    b = _pick_slabs_per_step(nc, h, w)
    g = nc // b
    bh = b * h

    # Contiguous reshapes only; keep native dtype (no extra f32 HBM copy).
    x3 = x.reshape(g, bh, w)
    y3 = y.reshape(g, bh, w)
    l_big, r_w = _laplacian_operators(h, w, b)

    # TODO(synk): for very large H/W (operator matrices / slabs too big for
    # VMEM) add halo row-strip tiling; current design targets loss-crop sizes.
    partials = pl.pallas_call(
        _edge_loss_kernel,
        out_shape=jax.ShapeDtypeStruct((g, 1, w), jnp.float32),
        grid_spec=pltpu.PrefetchScalarGridSpec(
            num_scalar_prefetch=0,
            grid=(g,),
            in_specs=[
                pl.BlockSpec((1, bh, w), lambda i: (i, 0, 0)),
                pl.BlockSpec((1, bh, w), lambda i: (i, 0, 0)),
                pl.BlockSpec((bh, bh), lambda i: (0, 0)),
                pl.BlockSpec((w, w), lambda i: (0, 0)),
            ],
            out_specs=pl.BlockSpec((1, 1, w), lambda i: (i, 0, 0)),
        ),
        compiler_params=pltpu.CompilerParams(
            dimension_semantics=("parallel",)),
    )(x3, y3, l_big, r_w)

    return jnp.sum(partials) / jnp.float32(nc * h * w)


def _reference_edge_loss(x, y):
    """Pure-JAX reference matching the PyTorch EdgeLoss forward."""
    taps = [float(t) for t in _GAUSS_TAPS]

    def conv_gauss(img):
        h, w = img.shape[2], img.shape[3]
        p = jnp.pad(img, ((0, 0), (0, 0), (2, 2), (2, 2)), mode="edge")
        rows = sum(taps[k + 2] * p[:, :, 2 + k:2 + k + h, :] for k in range(-2, 3))
        return sum(taps[k + 2] * rows[:, :, :, 2 + k:2 + k + w] for k in range(-2, 3))

    def laplacian(img):
        filtered = conv_gauss(img)
        h, w = img.shape[2], img.shape[3]
        mh = (jnp.arange(h) % 2 == 0).astype(img.dtype)[:, None]
        mw = (jnp.arange(w) % 2 == 0).astype(img.dtype)[None, :]
        filtered = conv_gauss(filtered * 4.0 * mh * mw)
        return img - filtered

    diff = laplacian(x.astype(jnp.float32)) - laplacian(y.astype(jnp.float32))
    return jnp.mean(jnp.sqrt(diff * diff + jnp.float32(_EPS * _EPS)))


if __name__ == "__main__":
    key = jax.random.PRNGKey(0)
    kx, ky = jax.random.split(key)
    # EdgeLoss's Gaussian kernel is built for 3 channels (groups=3).
    x = jax.random.uniform(kx, (2, 3, 16, 16), dtype=jnp.float32)
    y = jax.random.uniform(ky, (2, 3, 16, 16), dtype=jnp.float32)

    loss = edge_loss(x, y)
    jax.block_until_ready(loss)

    ref = _reference_edge_loss(x, y)
    jax.block_until_ready(ref)
    assert np.allclose(np.asarray(loss), np.asarray(ref), rtol=1e-2, atol=1e-3), (
        float(loss), float(ref))

    print("KERNEL_OK")
</pallas_src>

<mosaic_0001>
module attributes {stable_mosaic.version = 11 : i64} {
  func.func @_edge_loss_kernel(%arg0: i32, %arg1: memref<1x96x16xf32, #tpu.memory_space<vmem>>, %arg2: memref<1x96x16xf32, #tpu.memory_space<vmem>>, %arg3: memref<96x96xf32, #tpu.memory_space<vmem>>, %arg4: memref<16x16xf32, #tpu.memory_space<vmem>>, %arg5: memref<1x1x16xf32, #tpu.memory_space<vmem>>) attributes {dimension_semantics = [#tpu.dimension_semantics<parallel>], iteration_bounds = array<i64: 1>, scalar_prefetch = 0 : i64, scratch_operands = 0 : i64, tpu.core_type = #tpu.core_type<tc>, window_params = [{transform_indices = @transform_0, window_bounds = array<i64: 1, 96, 16>}, {transform_indices = @transform_1, window_bounds = array<i64: 1, 96, 16>}, {pipeline_mode = #tpu.pipeline_mode<synchronous>, transform_indices = @transform_2, window_bounds = array<i64: 96, 96>}, {pipeline_mode = #tpu.pipeline_mode<synchronous>, transform_indices = @transform_3, window_bounds = array<i64: 16, 16>}, {transform_indices = @transform_4, window_bounds = array<i64: 1, 1, 16>}]} {
    %c0 = arith.constant 0 : index
    %c0_0 = arith.constant 0 : index
    %c0_1 = arith.constant 0 : index
    %0 = vector.load %arg1[%c0, %c0_0, %c0_1] : memref<1x96x16xf32, #tpu.memory_space<vmem>>, vector<1x96x16xf32>
    %1 = vector.shape_cast %0 : vector<1x96x16xf32> to vector<96x16xf32>
    %c0_2 = arith.constant 0 : index
    %c0_3 = arith.constant 0 : index
    %c0_4 = arith.constant 0 : index
    %2 = vector.load %arg2[%c0_2, %c0_3, %c0_4] : memref<1x96x16xf32, #tpu.memory_space<vmem>>, vector<1x96x16xf32>
    %3 = vector.shape_cast %2 : vector<1x96x16xf32> to vector<96x16xf32>
    %4 = arith.subf %1, %3 : vector<96x16xf32>
    %c0_5 = arith.constant 0 : index
    %c0_6 = arith.constant 0 : index
    %5 = vector.load %arg4[%c0_5, %c0_6] : memref<16x16xf32, #tpu.memory_space<vmem>>, vector<16x16xf32>
    %cst = arith.constant dense<0.000000e+00> : vector<96x16xf32>
    %6 = tpu.matmul %4, %5, %cst {dimension_numbers = #tpu.dot_dimension_numbers<[1], [0], [0], [1], [0, 0, 1, 1], [], []>} : vector<96x16xf32>, vector<16x16xf32>, vector<96x16xf32> -> vector<96x16xf32>
    %c0_7 = arith.constant 0 : index
    %c0_8 = arith.constant 0 : index
    %7 = vector.load %arg3[%c0_7, %c0_8] : memref<96x96xf32, #tpu.memory_space<vmem>>, vector<96x96xf32>
    %cst_9 = arith.constant dense<0.000000e+00> : vector<96x16xf32>
    %8 = tpu.matmul %7, %6, %cst_9 {dimension_numbers = #tpu.dot_dimension_numbers<[1], [0], [0], [1], [0, 0, 1, 1], [], []>} : vector<96x96xf32>, vector<96x16xf32>, vector<96x16xf32> -> vector<96x16xf32>
    %9 = arith.subf %4, %8 : vector<96x16xf32>
    %10 = arith.mulf %9, %9 : vector<96x16xf32>
    %cst_10 = arith.constant 9.99999997E-7 : f32
    %11 = vector.broadcast %cst_10 : f32 to vector<96x16xf32>
    %12 = arith.addf %10, %11 : vector<96x16xf32>
    %13 = math.sqrt %12 : vector<96x16xf32>
    %cst_11 = arith.constant dense<0.000000e+00> : vector<16xf32>
    %14 = vector.multi_reduction <add>, %13, %cst_11 [0] : vector<96x16xf32> to vector<16xf32>
    %15 = vector.shape_cast %14 : vector<16xf32> to vector<1x16xf32>
    %16 = vector.shape_cast %15 : vector<1x16xf32> to vector<1x1x16xf32>
    %c0_12 = arith.constant 0 : index
    %c0_13 = arith.constant 0 : index
    %c0_14 = arith.constant 0 : index
    %17 = vector.load %arg5[%c0_12, %c0_13, %c0_14] : memref<1x1x16xf32, #tpu.memory_space<vmem>>, vector<1x1x16xf32>
    tpu.vector_store %arg5[%c0_12, %c0_13, %c0_14], %16 {strides = array<i32>} : memref<1x1x16xf32, #tpu.memory_space<vmem>>, vector<1x1x16xf32>,
    return
  }
  func.func @transform_0(%arg0: i32) -> (i32, i32, i32) {
    %c0_i32 = arith.constant 0 : i32
    %c0_i32_0 = arith.constant 0 : i32
    %c0_i32_1 = arith.constant 0 : i32
    return %arg0, %c0_i32, %c0_i32_0 : i32, i32, i32
  }
  func.func @transform_1(%arg0: i32) -> (i32, i32, i32) {
    %c0_i32 = arith.constant 0 : i32
    %c0_i32_0 = arith.constant 0 : i32
    %c0_i32_1 = arith.constant 0 : i32
    return %arg0, %c0_i32, %c0_i32_0 : i32, i32, i32
  }
  func.func @transform_2(%arg0: i32) -> (i32, i32) {
    %c0_i32 = arith.constant 0 : i32
    %c0_i32_0 = arith.constant 0 : i32
    %c0_i32_1 = arith.constant 0 : i32
    return %c0_i32, %c0_i32_0 : i32, i32
  }
  func.func @transform_3(%arg0: i32) -> (i32, i32) {
    %c0_i32 = arith.constant 0 : i32
    %c0_i32_0 = arith.constant 0 : i32
    %c0_i32_1 = arith.constant 0 : i32
    return %c0_i32, %c0_i32_0 : i32, i32
  }
  func.func @transform_4(%arg0: i32) -> (i32, i32, i32) {
    %c0_i32 = arith.constant 0 : i32
    %c0_i32_0 = arith.constant 0 : i32
    %c0_i32_1 = arith.constant 0 : i32
    return %arg0, %c0_i32, %c0_i32_0 : i32, i32, i32
  }
}

</mosaic_0001>

<bundles_post_ra>
// kernel: tpu_custom_call.1
= control target key start
LH: loop header
LB: loop body
LE: loop exit
PB: predicated region body
PF: predicated region fallthrough
CT: control target
= control target key end

     0   :  { %vm56_vm0 = vcmask 130048   ;;  %s1090_s0 = inlined_call_operand.vmem [shape: f32[1,96,16], index: 0, kind: input, shape index: {}]   ;;  %s1091_s1 = inlined_call_operand.vmem [shape: f32[1,96,16], index: 1, kind: input, shape index: {}]   ;;  %s1092_s2 = inlined_call_operand.vmem [shape: f32[96,96], index: 2, kind: input, shape index: {}]   ;;  %s1093_s3 = inlined_call_operand.vmem [shape: f32[16,16], index: 3, kind: input, shape index: {}]   ;;  %s1094_s4 = inlined_call_operand.hbm [shape: f32[1,1,16], index: 4, kind: output, shape index: {}]  }
   0x1   :  { %v54_v0 = vld [vmem:[%s1093_s3] sm:$0xff]  ;;  %v55_v1 = vld [vmem:[%s1093_s3 + $0x8] sm:$0xff]  ;;  %v20_v8 = vld [vmem:[%s1090_s0 + $0x10] sm:$0xff] }
   0x2   :  { %v18_v2 = vld [vmem:[%s1090_s0] sm:$0xff]  ;;  %v683_v3 = vpack.c.bf16 %v55_v1, %v54_v0  ;;  %v19_v5 = vld [vmem:[%s1090_s0 + $0x8] sm:$0xff]  ;;  %v32_v9 = vld [vmem:[%s1091_s1 + $0x10] sm:$0xff] }
   0x3   :  { %v30_v4 = vld [vmem:[%s1091_s1] sm:$0xff]  ;;  %v31_v6 = vld [vmem:[%s1091_s1 + $0x8] sm:$0xff]  ;;  %v828_v11 = vsub.f32 %v20_v8, %v32_v9  ;;  %v21_v12 = vld [vmem:[%s1090_s0 + $0x18] sm:$0xff] }
   0x4   :  { %v816_v7 = vsub.f32 %v18_v2, %v30_v4  ;;  %684 = vmatprep.subr.bf16.mxu0 %v683_v3  ;;  %v824_v10 = vsub.f32 %v19_v5, %v31_v6  ;;  %v33_v13 = vld [vmem:[%s1091_s1 + $0x18] sm:$0xff]  ;;  %v22_v14 = vld [vmem:[%s1090_s0 + $0x20] sm:$0xff]  ;;  %v23_v18 = vld [vmem:[%s1090_s0 + $0x28] sm:$0xff] }
   0x5   :  { %686 = vmatpush3.bf16.msra.mxu0 %v683_v3  ;;  %v34_v15 = vld [vmem:[%s1091_s1 + $0x20] sm:$0xff]  ;;  %v844_v16 = vsub.f32 %v21_v12, %v33_v13  ;;  %v35_v19 = vld [vmem:[%s1091_s1 + $0x28] sm:$0xff] }
   0x6   :  { %623 = vmatprep.mubr.msk.f32.mxu0 %vm56_vm0, %v816_v7  ;;  %v848_v17 = vsub.f32 %v22_v14, %v34_v15 }
   0x8   :  { %624 = vmatmul.mubr.msk.f32.vlgmr.msra.gmra.mrb[0].mxu0 %vm56_vm0, %v824_v10 }
   0x9   :  { %626 = vmatprep.mubr.msk.f32.mxu0 %vm56_vm0, %v828_v11 }
   0xa   :  { %9 = vsyncpa [#allocation3], 0  ;;  %v24_v20 = vld [vmem:[%s1090_s0 + $0x30] sm:$0xff]  ;;  %v864_v22 = vsub.f32 %v23_v18, %v35_v19  ;;  %v25_v24 = vld [vmem:[%s1090_s0 + $0x38] sm:$0xff]  ;;  %vm230_vm1 = vcmask 785408  }
   0xb   :  { %v36_v21 = vld [vmem:[%s1091_s1 + $0x30] sm:$0xff]  ;;  %v37_v25 = vld [vmem:[%s1091_s1 + $0x38] sm:$0xff]  ;;  %v26_v26 = vld [vmem:[%s1090_s0 + $0x40] sm:$0xff] }
   0xc   :  { %627 = vmatmul.mubr.msk.f32.gmra.mrb[2].mxu0 %vm56_vm0, %v844_v16  ;;  %v868_v23 = vsub.f32 %v24_v20, %v36_v21  ;;  %v38_v27 = vld [vmem:[%s1091_s1 + $0x40] sm:$0xff]  ;;  %v884_v28 = vsub.f32 %v25_v24, %v37_v25  ;;  %v27_v30 = vld [vmem:[%s1090_s0 + $0x48] sm:$0xff]  ;;  %v28_v32 = vld [vmem:[%s1090_s0 + $0x50] sm:$0xff] }
   0xd   :  { %629 = vmatprep.mubr.msk.f32.mxu0 %vm56_vm0, %v848_v17  ;;  %v888_v29 = vsub.f32 %v26_v26, %v38_v27  ;;  %v39_v31 = vld [vmem:[%s1091_s1 + $0x48] sm:$0xff]  ;;  %v40_v33 = vld [vmem:[%s1091_s1 + $0x50] sm:$0xff]  ;;  %v29_v36 = vld [vmem:[%s1090_s0 + $0x58] sm:$0xff] }
   0xe   :  { %v904_v34 = vsub.f32 %v27_v30, %v39_v31  ;;  %v908_v35 = vsub.f32 %v28_v32, %v40_v33  ;;  %v41_v37 = vld [vmem:[%s1091_s1 + $0x58] sm:$0xff]  ;;  %v218_v39 = vld [vmem:[%s1092_s2] sm:$0xff]  ;;  %v219_v59 = vld [vmem:[%s1092_s2 + $0x8] sm:$0xff] }
   0xf   :  { %v918_v38 = vsub.f32 %v29_v36, %v41_v37  ;;  %v222_v40 = vld [vmem:[%s1092_s2 + $0x20] sm:$0xff]  ;;  %v223_v60 = vld [vmem:[%s1092_s2 + $0x28] sm:$0xff]  ;;  %v220_v61 = vld [vmem:[%s1092_s2 + $0x10] sm:$0xff] }
  0x10   :  { %630 = vmatmul.mubr.msk.f32.gmra.mrb[4].mxu0 %vm56_vm0, %v864_v22  ;;  %671 = vmatprep.mubr.msk.f32.mxu1 %vm230_vm1, %v222_v40  ;;  %v224_v62 = vld [vmem:[%s1092_s2 + $0x30] sm:$0xff]  ;;  %v221_v63 = vld [vmem:[%s1092_s2 + $0x18] sm:$0xff]  ;;  %v226_v1 = vld [vmem:[%s1092_s2 + $0x40] sm:$0xff] }
  0x11   :  { %632 = vmatprep.mubr.msk.f32.mxu0 %vm56_vm0, %v868_v23  ;;  %v225_v0 = vld [vmem:[%s1092_s2 + $0x38] sm:$0xff]  ;;  %v227_v2 = vld [vmem:[%s1092_s2 + $0x48] sm:$0xff]  ;;  %v228_v3 = vld [vmem:[%s1092_s2 + $0x50] sm:$0xff] }
  0x12   :  { %v229_v4 = vld [vmem:[%s1092_s2 + $0x58] sm:$0xff]  ;;  %s772_s2 = smov [#allocation2]  }
  0x13   :  { %s549_s8 = sshll.u32 %s772_s2, 4  ;;  %s550_s8 = int_to_ptr.vmem [resolvable:$true] %s549_s8 }
  0x14   :  { %633 = vmatmul.mubr.msk.f32.gmra.mrb[6].mxu0 %vm56_vm0, %v884_v28  ;;  %s748_s9 = scalar_lea.vmem %s550_s8, 16  ;;  %s752_s10 = scalar_lea.vmem %s550_s8, 32 }
  0x15   :  { %635 = vmatprep.mubr.msk.f32.mxu0 %vm56_vm0, %v888_v29  ;;  %p749_p0 = scmp.ne.s32.totalorder %s550_s8, %s748_s9  ;;  %p753_p1 = scmp.lt.s32.totalorder %s550_s8, %s550_s8 }
  0x16   :  { %p754_p2 = scmp.lt.s32.totalorder %s752_s10, %s748_s9 }
  0x18   :  { %636 = vmatmul.mubr.msk.f32.gmra.mrb[8].mxu0 %vm56_vm0, %v904_v34  ;;  %p755_p3 = por %p754_p2, %p753_p1 }
  0x19   :  { %638 = vmatprep.mubr.msk.f32.mxu0 %vm56_vm0, %v908_v35 }
  0x1a   :  { %p756_p4 = pnand %p755_p3, %p749_p0 }
  0x1c   :  { %639 = vmatmul.mubr.msk.f32.gmra.mrb[10].mxu0 %vm56_vm0, %v918_v38 }
  0x1d   :  { %665 = vmatprep.mubr.msk.f32.mxu0 %vm230_vm1, %v218_v39 }
  0xdb   :  { %v625_v41 = vpop.f32.mrb[0].mxu0 }
  0xdc   :  { %v159_v42 = vpop.f32.mrb[1].mxu0 }
  0xdd   :  { %v687_v43 = vpack.c.bf16 %v625_v41, %v159_v42 }
  0xdf   :  { %v628_v44 = vpop.f32.mrb[2].mxu0  ;;  %688 = vmatprep.subr.bf16.mxu0 %v687_v43  ;;  %711 = vmatprep.subr.bf16.mxu1 %v687_v43 }
  0xe0   :  { %v169_v45 = vpop.f32.mrb[3].mxu0  ;;  %690 = vmatpush3.bf16.msra.mxu0 %v687_v43  ;;  %717 = vmatpush3.bf16.msra.mxu1 %v687_v43 }
  0xe1   :  { %v691_v46 = vpack.c.bf16 %v628_v44, %v169_v45 }
  0xe3   :  { %v631_v47 = vpop.f32.mrb[4].mxu0  ;;  %692 = vmatprep.subr.bf16.mxu0 %v691_v46  ;;  %712 = vmatprep.subr.bf16.mxu1 %v691_v46 }
  0xe4   :  { %v179_v48 = vpop.f32.mrb[5].mxu0  ;;  %694 = vmatpush3.bf16.msra.mxu0 %v691_v46  ;;  %718 = vmatpush3.bf16.msra.mxu1 %v691_v46 }
  0xe5   :  { %v695_v49 = vpack.c.bf16 %v631_v47, %v179_v48 }
  0xe7   :  { %v634_v50 = vpop.f32.mrb[6].mxu0  ;;  %696 = vmatprep.subr.bf16.mxu0 %v695_v49  ;;  %713 = vmatprep.subr.bf16.mxu1 %v695_v49 }
  0xe8   :  { %v189_v51 = vpop.f32.mrb[7].mxu0  ;;  %698 = vmatpush3.bf16.msra.mxu0 %v695_v49  ;;  %719 = vmatpush3.bf16.msra.mxu1 %v695_v49 }
  0xe9   :  { %v699_v52 = vpack.c.bf16 %v634_v50, %v189_v51 }
  0xeb   :  { %v637_v53 = vpop.f32.mrb[8].mxu0  ;;  %700 = vmatprep.subr.bf16.mxu0 %v699_v52  ;;  %714 = vmatprep.subr.bf16.mxu1 %v699_v52 }
  0xec   :  { %v199_v54 = vpop.f32.mrb[9].mxu0  ;;  %702 = vmatpush3.bf16.msra.mxu0 %v699_v52  ;;  %720 = vmatpush3.bf16.msra.mxu1 %v699_v52 }
  0xed   :  { %v703_v55 = vpack.c.bf16 %v637_v53, %v199_v54 }
  0xef   :  { %v640_v56 = vpop.f32.mrb[10].mxu0  ;;  %704 = vmatprep.subr.bf16.mxu0 %v703_v55  ;;  %715 = vmatprep.subr.bf16.mxu1 %v703_v55 }
  0xf0   :  { %v209_v57 = vpop.f32.mrb[11].mxu0  ;;  %706 = vmatpush3.bf16.msra.mxu0 %v703_v55  ;;  %721 = vmatpush3.bf16.msra.mxu1 %v703_v55 }
  0xf1   :  { %v707_v58 = vpack.c.bf16 %v640_v56, %v209_v57 }
  0xf3   :  { %708 = vmatprep.subr.bf16.mxu0 %v707_v58  ;;  %716 = vmatprep.subr.bf16.mxu1 %v707_v58 }
  0xf4   :  { %710 = vmatpush3.bf16.msra.mxu0 %v707_v58  ;;  %722 = vmatpush3.bf16.msra.mxu1 %v707_v58 }
  0xf7   :  { %666 = vmatmul.mubr.msk.f32.vlgmr.msra.gmra.mrb[12].mxu0 %vm230_vm1, %v219_v59  ;;  %672 = vmatmul.mubr.msk.f32.vlgmr.msra.gmra.mrb[0].mxu1 %vm230_vm1, %v223_v60 }
  0xf8   :  { %668 = vmatprep.mubr.msk.f32.mxu0 %vm230_vm1, %v220_v61  ;;  %674 = vmatprep.mubr.msk.f32.mxu1 %vm230_vm1, %v224_v62 }
  0xfb   :  { %669 = vmatmul.mubr.msk.f32.gmra.mrb[14].mxu0 %vm230_vm1, %v221_v63  ;;  %675 = vmatmul.mubr.msk.f32.gmra.mrb[2].mxu1 %vm230_vm1, %v225_v0 }
  0xfc   :  { %677 = vmatprep.mubr.msk.f32.mxu1 %vm230_vm1, %v226_v1 }
  0xff   :  { %678 = vmatmul.mubr.msk.f32.gmra.mrb[4].mxu1 %vm230_vm1, %v227_v2 }
 0x100   :  { %680 = vmatprep.mubr.msk.f32.mxu1 %vm230_vm1, %v228_v3 }
 0x103   :  { %681 = vmatmul.mubr.msk.f32.gmra.mrb[6].mxu1 %vm230_vm1, %v229_v4 }
 0x1ca   :  { %v667_v5 = vpop.f32.mrb[12].mxu0  ;;  %v673_v6 = vpop.f32.mrb[0].mxu1 }
 0x1cb   :  { %v393_v8 = vsub.f32 %v824_v10, %v667_v5  ;;  %v333_v9 = vpop.f32.mrb[13].mxu0  ;;  %v353_v12 = vpop.f32.mrb[1].mxu1  ;;  %v397_v13 = vsub.f32 %v864_v22, %v673_v6 }
 0x1cc   :  { %v392_v14 = vsub.f32 %v816_v7, %v333_v9  ;;  %v396_v15 = vsub.f32 %v848_v17, %v353_v12 }
 0x1cd   :  { %v405_v18 = vmul.f32 %v393_v8, %v393_v8  ;;  %v409_v30 = vmul.f32 %v397_v13, %v397_v13 }
 0x1ce   :  { %v404_v19 = vmul.f32 %v392_v14, %v392_v14  ;;  %v670_v20 = vpop.f32.mrb[14].mxu0  ;;  %v676_v21 = vpop.f32.mrb[2].mxu1  ;;  %v408_v25 = vmul.f32 %v396_v15, %v396_v15 }
 0x1cf   :  { %v417_v24 = vadd.f32 1e-06, %v405_v18  ;;  %v343_v26 = vpop.f32.mrb[15].mxu0  ;;  %v363_v27 = vpop.f32.mrb[3].mxu1  ;;  %v395_v10 = vsub.f32 %v844_v16, %v670_v20  ;;  %v399_v32 = vsub.f32 %v884_v28, %v676_v21  ;;  %v982_v37 = vadd.f32 1e-06, %v409_v30 }
 0x1d0   :  { %v416_v31 = vadd.f32 1e-06, %v404_v19  ;;  %v394_v22 = vsub.f32 %v828_v11, %v343_v26  ;;  %v398_v7 = vsub.f32 %v868_v23, %v363_v27  ;;  %v980_v33 = vadd.f32 1e-06, %v408_v25 }
 0x1d1   :  { %724 = vrsqrt.f32 %v417_v24  ;;  %v407_v39 = vmul.f32 %v395_v10, %v395_v10  ;;  %v411_v40 = vmul.f32 %v399_v32, %v399_v32  ;;  %vm437_vm2 = vcmp.eq.f32.partialorder %v417_v24, inf }
 0x1d2   :  { %v679_v17 = vpop.f32.mrb[4].mxu1  ;;  %726 = vrsqrt.f32 %v416_v31  ;;  %v406_v41 = vmul.f32 %v394_v22, %v394_v22  ;;  %v410_v42 = vmul.f32 %v398_v7, %v398_v7  ;;  %v440_v51 = vand.u32 2147483648, %v417_v24 }
 0x1d3   :  { %v373_v36 = vpop.f32.mrb[5].mxu1  ;;  %v401_v16 = vsub.f32 %v904_v34, %v679_v17  ;;  %728 = vrsqrt.f32 %v980_v33  ;;  %v987_v11 = vadd.f32 1e-06, %v407_v39  ;;  %v995_v46 = vadd.f32 1e-06, %v411_v40 }
 0x1d4   :  { %v400_v43 = vsub.f32 %v888_v29, %v373_v36  ;;  %v989_v23 = vadd.f32 1e-06, %v406_v41  ;;  %730 = vrsqrt.f32 %v982_v37  ;;  %v992_v44 = vadd.f32 1e-06, %v410_v42 }
 0x1d5   :  { %732 = vrsqrt.f32 %v987_v11  ;;  %v413_v47 = vmul.f32 %v401_v16, %v401_v16  ;;  %vm439_vm3 = vcmp.eq.f32.partialorder %v417_v24, 0.0  ;;  %vm430_vm4 = vcmp.eq.f32.partialorder %v416_v31, inf }
 0x1d6   :  { %v682_v28 = vpop.f32.mrb[6].mxu1  ;;  %v412_v34 = vmul.f32 %v400_v43, %v400_v43  ;;  %734 = vrsqrt.f32 %v989_v23  ;;  %vm432_vm5 = vcmp.eq.f32.partialorder %v416_v31, 0.0  ;;  %v433_v57 = vand.u32 2147483648, %v416_v31 }
 0x1d7   :  { %v383_v45 = vpop.f32.mrb[7].mxu1  ;;  %v403_v29 = vsub.f32 %v918_v38, %v682_v28  ;;  %736 = vrsqrt.f32 %v992_v44  ;;  %v1001_v52 = vadd.f32 1e-06, %v413_v47  ;;  %vm458_vm6 = vcmp.eq.f32.partialorder %v980_v33, inf }
 0x1d8   :  { %738 = vrsqrt.f32 %v995_v46  ;;  %v1003_v53 = vadd.f32 1e-06, %v412_v34  ;;  %v402_v60 = vsub.f32 %v908_v35, %v383_v45  ;;  %vm451_vm7 = vcmp.eq.f32.partialorder %v987_v11, inf }
 0x1d9   :  { %v415_v38 = vmul.f32 %v403_v29, %v403_v29  ;;  %740 = vrsqrt.f32 %v1001_v52  ;;  %vm453_vm8 = vcmp.eq.f32.partialorder %v987_v11, 0.0  ;;  %v454_v18 = vand.u32 2147483648, %v987_v11 }
 0x1da   :  { %742 = vrsqrt.f32 %v1003_v53  ;;  %v414_v6 = vmul.f32 %v402_v60, %v402_v60  ;;  %vm444_vm9 = vcmp.eq.f32.partialorder %v989_v23, inf  ;;  %vm446_vm10 = vcmp.eq.f32.partialorder %v989_v23, 0.0 }
 0x1db   :  { %v725_v48 = vpop.eup %724  ;;  %v1010_v3 = vadd.f32 1e-06, %v415_v38  ;;  %v447_v19 = vand.u32 2147483648, %v989_v23  ;;  %vm465_vm11 = vcmp.eq.f32.partialorder %v982_v37, inf  ;;  %v461_v25 = vand.u32 2147483648, %v980_v33 }
 0x1dc   :  { %v436_v49 = vmul.f32 %v725_v48, %v417_v24  ;;  %v727_v50 = vpop.eup %726  ;;  %v1021_v14 = vadd.f32 1e-06, %v414_v6  ;;  %vm460_vm12 = vcmp.eq.f32.partialorder %v980_v33, 0.0  ;;  %v468_v7 = vand.u32 2147483648, %v982_v37 }
 0x1dd   :  { %v429_v55 = vmul.f32 %v727_v50, %v416_v31  ;;  %v729_v61 = vpop.eup %728  ;;  %744 = vrsqrt.f32 %v1010_v3  ;;  %vm472_vm13 = vcmp.eq.f32.partialorder %v992_v44, inf  ;;  %vm467_vm14 = vcmp.eq.f32.partialorder %v982_v37, 0.0 }
 0x1de   :  { %v438_v54 = vsel %vm437_vm2, %v417_v24, %v436_v49  ;;  %v731_v63 = vpop.eup %730  ;;  %v457_v4 = vmul.f32 %v729_v61, %v980_v33  ;;  %746 = vrsqrt.f32 %v1021_v14  ;;  %vm479_vm15 = vcmp.eq.f32.partialorder %v995_v46, inf }
 0x1df   :  { %v441_v56 = vsel %vm439_vm3, %v440_v51, %v438_v54  ;;  %v431_v59 = vsel %vm430_vm4, %v416_v31, %v429_v55  ;;  %v733_v1 = vpop.eup %732  ;;  %v464_v9 = vmul.f32 %v731_v63, %v982_v37  ;;  %v475_v42 = vand.u32 2147483648, %v992_v44 }
 0x1e0   :  { %v513_v58 = vsel %vm56_vm0, %v441_v56, 0.0  ;;  %v434_v62 = vsel %vm432_vm5, %v433_v57, %v431_v59  ;;  %v450_v5 = vmul.f32 %v733_v1, %v987_v11  ;;  %v735_v8 = vpop.eup %734  ;;  %v459_v20 = vsel %vm458_vm6, %v980_v33, %v457_v4 }
 0x1e1   :  { %v512_v0 = vsel %vm56_vm0, %v434_v62, 0.0  ;;  %v737_v35 = vpop.eup %736  ;;  %v443_v13 = vmul.f32 %v735_v8, %v989_v23  ;;  %v466_v31 = vsel %vm465_vm11, %v982_v37, %v464_v9  ;;  %v462_v17 = vsel %vm460_vm12, %v461_v25, %v459_v20 }
 0x1e2   :  { %v514_v2 = vadd.f32 %v513_v58, %v512_v0  ;;  %v452_v12 = vsel %vm451_vm7, %v987_v11, %v450_v5  ;;  %v739_v15 = vpop.eup %738  ;;  %v471_v24 = vmul.f32 %v737_v35, %v992_v44  ;;  %v469_v33 = vsel %vm467_vm14, %v468_v7, %v466_v31 }
 0x1e3   :  { %v445_v21 = vsel %vm444_vm9, %v989_v23, %v443_v13  ;;  %v455_v26 = vsel %vm453_vm8, %v454_v18, %v452_v12  ;;  %v741_v30 = vpop.eup %740  ;;  %v478_v10 = vmul.f32 %v739_v15, %v995_v46  ;;  %v519_v43 = vsel %vm56_vm0, %v462_v17, 0.0 }
 0x1e4   :  { %v448_v27 = vsel %vm446_vm10, %v447_v19, %v445_v21  ;;  %v743_v22 = vpop.eup %742  ;;  %v517_v39 = vsel %vm56_vm0, %v455_v26, 0.0  ;;  %v473_v40 = vsel %vm472_vm13, %v992_v44, %v471_v24  ;;  %vm474_vm1 = vcmp.eq.f32.partialorder %v992_v44, 0.0 }
 0x1e5   :  { %v515_v32 = vsel %vm56_vm0, %v448_v27, 0.0  ;;  %v485_v41 = vmul.f32 %v743_v22, %v1003_v53  ;;  %v480_v28 = vsel %vm479_vm15, %v995_v46, %v478_v10  ;;  %v492_v37 = vmul.f32 %v741_v30, %v1001_v52 }
 0x1e6   :  { %v516_v36 = vadd.f32 %v515_v32, %v514_v2  ;;  %v482_v23 = vand.u32 2147483648, %v995_v46  ;;  %vm486_vm2 = vcmp.eq.f32.partialorder %v1003_v53, inf  ;;  %v476_v45 = vsel %vm474_vm1, %v475_v42, %v473_v40 }
 0x1e7   :  { %v745_v11 = vpop.eup %744  ;;  %vm481_vm3 = vcmp.eq.f32.partialorder %v995_v46, 0.0  ;;  %v487_v34 = vsel %vm486_vm2, %v1003_v53, %v485_v41  ;;  %v521_v48 = vsel %vm56_vm0, %v469_v33, 0.0  ;;  %vm493_vm4 = vcmp.eq.f32.partialorder %v1001_v52, inf }
 0x1e8   :  { %v518_v16 = vadd.f32 %v517_v39, %v516_v36  ;;  %v489_v29 = vand.u32 2147483648, %v1003_v53  ;;  %v483_v44 = vsel %vm481_vm3, %v482_v23, %v480_v28  ;;  %v747_v50 = vpop.eup %746  ;;  %vm488_vm5 = vcmp.eq.f32.partialorder %v1003_v53, 0.0 }
 0x1e9   :  { %v494_v51 = vsel %vm493_vm4, %v1001_v52, %v492_v37  ;;  %v506_v54 = vmul.f32 %v745_v11, %v1010_v3  ;;  %v523_v55 = vsel %vm56_vm0, %v476_v45, 0.0  ;;  %v496_v46 = vand.u32 2147483648, %v1001_v52 }
 0x1ea   :  { %v520_v47 = vadd.f32 %v519_v43, %v518_v16  ;;  %v499_v56 = vmul.f32 %v747_v50, %v1021_v14  ;;  %v490_v57 = vsel %vm488_vm5, %v489_v29, %v487_v34  ;;  %vm495_vm6 = vcmp.eq.f32.partialorder %v1001_v52, 0.0 }
 0x1eb   :  { %vm500_vm7 = vcmp.eq.f32.partialorder %v1021_v14, inf  ;;  %vm507_vm8 = vcmp.eq.f32.partialorder %v1010_v3, inf  ;;  %v525_v53 = vsel %vm56_vm0, %v483_v44, 0.0  ;;  %v497_v58 = vsel %vm495_vm6, %v496_v46, %v494_v51 }
 0x1ec   :  { %v522_v49 = vadd.f32 %v521_v48, %v520_v47  ;;  %v501_v59 = vsel %vm500_vm7, %v1021_v14, %v499_v56  ;;  %v503_v60 = vand.u32 2147483648, %v1021_v14  ;;  %vm502_vm9 = vcmp.eq.f32.partialorder %v1021_v14, 0.0 }
 0x1ed   :  { %v508_v62 = vsel %vm507_vm8, %v1010_v3, %v506_v54  ;;  %v527_v63 = vsel %vm56_vm0, %v490_v57, 0.0  ;;  %v510_v52 = vand.u32 2147483648, %v1010_v3  ;;  %vm509_vm10 = vcmp.eq.f32.partialorder %v1010_v3, 0.0 }
 0x1ee   :  { %v524_v38 = vadd.f32 %v523_v55, %v522_v49  ;;  %v504_v0 = vsel %vm502_vm9, %v503_v60, %v501_v59  ;;  %v529_v2 = vsel %vm56_vm0, %v497_v58, 0.0  ;;  %vm541_vm11 = vcmask 122880  }
 0x1ef   :  { %v511_v4 = vsel %vm509_vm10, %v510_v52, %v508_v62  ;;  %v531_v6 = vsel %vm56_vm0, %v504_v0, 0.0 }
 0x1f0   :  { %v526_v61 = vadd.f32 %v525_v53, %v524_v38  ;;  %v533_v35 = vsel %vm56_vm0, %v511_v4, 0.0 }
 0x1f2   :  { %v528_v1 = vadd.f32 %v527_v63, %v526_v61 }
 0x1f4   :  { %v530_v5 = vadd.f32 %v529_v2, %v528_v1 }
 0x1f6   :  { %v532_v8 = vadd.f32 %v531_v6, %v530_v5 }
 0x1f8   :  { %v534_v9 = vadd.f32 %v533_v35, %v532_v8 }
 0x1fa   :  { %v535_v12 = vrot.slane %v534_v9, 4 }
 0x1fc   :  { %v536_v13 = vadd.f32 %v535_v12, %v534_v9 }
 0x1fe   :  { %v537_v14 = vrot.slane %v536_v13, 2 }
 0x200   :  { %v538_v15 = vadd.f32 %v537_v14, %v536_v13 }
 0x202   :  { %v539_v18 = vrot.slane %v538_v15, 1 }
 0x204   :  { %v540_v19 = vadd.f32 %v539_v18, %v538_v15 }
 0x206   :  { %542 = vst.msk [vmem:[#allocation2] sm:$0x1] %vm541_vm11, %v540_v19 }
 0x207   :  { %759 = shalt.err (!%p756_p4)
}
 0x208   :  { %s760_s13 = scalar_lea.hbm %s1094_s4, 16 }
 0x209   :  { %p761_p5 = scmp.ne.s32.totalorder %s1094_s4, %s760_s13  ;;  %p764_p6 = scmp.lt.u32.totalorder %s760_s13, %s1094_s4 }
 0x20b   :  { %p766_p7 = pnand %p764_p6, %p761_p5 }
 0x20d   :  { %769 = shalt.err (!%p766_p7)
}
 0x20e   :  { %552 = dma.vmem_to_hbm [thread:$0]  %s550_s8, 16, %s1094_s4, [#allocation3]  }
 0x20f   :  { %770 = dma.done.wait [#allocation3], 16  }
 0x210   :  { %771 = vsyncadd [#allocation3], 4294967280 }
 0x211   :  { %556 = vsyncpa [#allocation3], 1 }

</bundles_post_ra>
